<compile_context>
chip_gen: v7x
topology: tpu7x:2x2x1
jax: 0.10.0
libtpu: 0.0.40
codegen_flags: <defaults>
</compile_context>

<pallas_src>
import functools

import jax
import jax.numpy as jnp
from jax.experimental import pallas as pl
from jax.experimental.pallas import tpu as pltpu


_VMEM_BUDGET = 24 * 1024 * 1024   # conservative tile budget: fits every gen's scoped VMEM
_VMEM_LIMIT = 48 * 1024 * 1024    # explicit scoped-VMEM limit (above v5e's 16 MiB default)


# ---------------------------------------------------------------------------
# Kernels
# ---------------------------------------------------------------------------

def _maybe_cast(v, dt):
    return v if dt is None else v.astype(dt)


def _bmm_noK_kernel(x_ref, y_ref, o_ref, *, compute_dtype=None):
    """grid = (B, Mt, Nt); batch squeezed; tk == K so there is no reduction axis."""
    x = _maybe_cast(x_ref[...], compute_dtype)
    y = _maybe_cast(y_ref[...], compute_dtype)
    o_ref[...] = jnp.dot(x, y, preferred_element_type=jnp.float32).astype(o_ref.dtype)


def _bmm_kacc_out_kernel(x_ref, y_ref, o_ref, *, compute_dtype=None):
    """grid = (B, Mt, Nt, Kt); f32 output block doubles as the accumulator."""
    k = pl.program_id(3)

    @pl.when(k == 0)
    def _():
        o_ref[...] = jnp.zeros_like(o_ref)

    x = _maybe_cast(x_ref[...], compute_dtype)
    y = _maybe_cast(y_ref[...], compute_dtype)
    o_ref[...] += jnp.dot(x, y, preferred_element_type=jnp.float32)


def _bmm_kacc_scratch_kernel(x_ref, y_ref, o_ref, acc_ref, *, compute_dtype=None):
    """grid = (B, Mt, Nt, Kt); non-f32 output -> separate f32 VMEM accumulator."""
    k = pl.program_id(3)

    @pl.when(k == 0)
    def _():
        acc_ref[...] = jnp.zeros_like(acc_ref)

    x = _maybe_cast(x_ref[...], compute_dtype)
    y = _maybe_cast(y_ref[...], compute_dtype)
    acc_ref[...] += jnp.dot(x, y, preferred_element_type=jnp.float32)

    @pl.when(k == pl.num_programs(3) - 1)
    def _():
        o_ref[...] = acc_ref[...].astype(o_ref.dtype)


def _bmm_small_kernel(x_ref, y_ref, o_ref, *, compute_dtype=None):
    """grid = (B//G,); refs are (G, M, K), (G, K, N), (G, M, N). Full K per step."""
    x = _maybe_cast(x_ref[...], compute_dtype)
    y = _maybe_cast(y_ref[...], compute_dtype)
    o_ref[...] = jnp.einsum(
        "gmk,gkn->gmn", x, y, preferred_element_type=jnp.float32
    ).astype(o_ref.dtype)


# ---------------------------------------------------------------------------
# Tiling helpers
# ---------------------------------------------------------------------------

def _round_up(x: int, m: int) -> int:
    return ((x + m - 1) // m) * m


def _pick_tile(dim: int, target: int, align: int = 128):
    """Return (tile, padded_dim).

    Full-extent blocks are always legal, so small dims are never padded. For
    large dims we prefer the largest `align`-multiple <= target that divides
    `dim`; otherwise we pick an aligned tile and pad `dim` up to a multiple of
    it (zero padding is exact for matmul; padded rows/cols are sliced off)."""
    if dim <= target:
        return dim, dim
    t = (target // align) * align
    tt = t
    while tt >= align:
        if dim % tt == 0:
            return tt, dim
        tt -= align
    # No aligned divisor <= target: pad, preferring big tiles unless waste is large.
    tt = t
    while tt > align:
        if _round_up(dim, tt) - dim <= tt // 4:
            return tt, _round_up(dim, tt)
        tt -= align
    return align, _round_up(dim, align)


def _largest_divisor_leq(n: int, cap: int) -> int:
    for g in range(min(n, cap), 0, -1):
        if n % g == 0:
            return g
    return 1


def _pad_to(a: jax.Array, shape) -> jax.Array:
    pads = [(0, s - d) for d, s in zip(a.shape, shape)]
    if any(hi for _, hi in pads):
        a = jnp.pad(a, pads)
    return a


# ---------------------------------------------------------------------------
# Wrapper
# ---------------------------------------------------------------------------

def bmm(x: jax.Array, y: jax.Array, *, compute_dtype=None) -> jax.Array:
    """Batched matmul: (B, M, K) @ (B, K, N) -> (B, M, N), matching torch.bmm."""
    B, M, K = x.shape
    B2, K2, N = y.shape
    assert B == B2 and K == K2, "shape mismatch for bmm"

    out_dtype = jnp.result_type(x.dtype, y.dtype)
    in_item = max(x.dtype.itemsize, y.dtype.itemsize)
    out_item = jnp.dtype(out_dtype).itemsize
    kern_kw = dict(compute_dtype=compute_dtype)

    # ---- small-matrix path: fold many batches per grid step, full K ----------
    per_batch_vmem = 2 * (M * K + K * N) * in_item + 2 * M * N * out_item
    if M <= 128 and N <= 128 and per_batch_vmem <= _VMEM_BUDGET:
        G = _largest_divisor_leq(B, max(1, _VMEM_BUDGET // per_batch_vmem))
        # TODO(synk): lane-dense (M, G*N) output packing would further speed up
        # stores for N < 128, but the in-kernel (G,M,N)->(M,G*N) relayout is not
        # portably supported by Mosaic, so the output stays (G, M, N).
        cost = pl.CostEstimate(
            flops=2 * B * M * N * K,
            transcendentals=0,
            bytes_accessed=(x.size * x.dtype.itemsize + y.size * y.dtype.itemsize
                            + B * M * N * out_item))
        return pl.pallas_call(
            functools.partial(_bmm_small_kernel, **kern_kw),
            out_shape=jax.ShapeDtypeStruct((B, M, N), out_dtype),
            grid_spec=pltpu.PrefetchScalarGridSpec(
                num_scalar_prefetch=0,
                grid=(B // G,),
                in_specs=[
                    pl.BlockSpec((G, M, K), lambda b: (b, 0, 0)),
                    pl.BlockSpec((G, K, N), lambda b: (b, 0, 0)),
                ],
                out_specs=pl.BlockSpec((G, M, N), lambda b: (b, 0, 0)),
            ),
            compiler_params=pltpu.CompilerParams(
                dimension_semantics=("parallel",),
                vmem_limit_bytes=_VMEM_LIMIT,
            ),
            cost_estimate=cost,
        )(x, y)

    # ---- general tiled path ---------------------------------------------------
    tm, Mp = _pick_tile(M, 512, 128)
    tn, Np = _pick_tile(N, 512, 128)

    # v7x has 2 TensorCores; make sure more than one parallel tile exists.
    if B * (Mp // tm) * (Np // tn) < 2:
        if tn >= 256 and (tn // 2) % 128 == 0 and Np % (tn // 2) == 0:
            tn //= 2
        elif tm >= 256 and (tm // 2) % 128 == 0 and Mp % (tm // 2) == 0:
            tm //= 2

    # tk = K fast path: constant x block index across the N-tile loop lets Pallas
    # skip the x re-DMA, and the accumulator init/finalize epilogue disappears.
    fullk_vmem = 2 * (tm * K + K * tn) * in_item + 2 * tm * tn * out_item
    if fullk_vmem <= _VMEM_BUDGET:
        tk, Kp = K, K
    else:
        tk, Kp = _pick_tile(K, 512, 128)

    x_p = _pad_to(x, (B, Mp, Kp))
    y_p = _pad_to(y, (B, Kp, Np))

    mt, nt, kt = Mp // tm, Np // tn, Kp // tk
    out_shape = jax.ShapeDtypeStruct((B, Mp, Np), out_dtype)

    # Effective HBM traffic under this schedule: x is read once (tk=K path,
    # constant across the j loop) or nt times; y is read mt times; out written once.
    x_traffic = (1 if kt == 1 else nt) * B * Mp * Kp * x.dtype.itemsize
    y_traffic = mt * B * Kp * Np * y.dtype.itemsize
    cost = pl.CostEstimate(
        flops=2 * B * Mp * Np * Kp,
        transcendentals=0,
        bytes_accessed=x_traffic + y_traffic + B * Mp * Np * out_item)

    cparams = pltpu.CompilerParams(
        dimension_semantics=("parallel",) * 3 + (("arbitrary",) if kt > 1 else ()),
        vmem_limit_bytes=_VMEM_LIMIT)

    if kt == 1:
        out = pl.pallas_call(
            functools.partial(_bmm_noK_kernel, **kern_kw),
            out_shape=out_shape,
            grid_spec=pltpu.PrefetchScalarGridSpec(
                num_scalar_prefetch=0,
                grid=(B, mt, nt),
                in_specs=[
                    pl.BlockSpec((None, tm, Kp), lambda b, i, j: (b, i, 0)),
                    pl.BlockSpec((None, Kp, tn), lambda b, i, j: (b, 0, j)),
                ],
                out_specs=pl.BlockSpec((None, tm, tn), lambda b, i, j: (b, i, j)),
            ),
            compiler_params=cparams,
            cost_estimate=cost,
        )(x_p, y_p)
    elif out_dtype == jnp.float32:
        out = pl.pallas_call(
            functools.partial(_bmm_kacc_out_kernel, **kern_kw),
            out_shape=out_shape,
            grid_spec=pltpu.PrefetchScalarGridSpec(
                num_scalar_prefetch=0,
                grid=(B, mt, nt, kt),
                in_specs=[
                    pl.BlockSpec((None, tm, tk), lambda b, i, j, k: (b, i, k)),
                    pl.BlockSpec((None, tk, tn), lambda b, i, j, k: (b, k, j)),
                ],
                out_specs=pl.BlockSpec((None, tm, tn), lambda b, i, j, k: (b, i, j)),
            ),
            compiler_params=cparams,
            cost_estimate=cost,
        )(x_p, y_p)
    else:
        out = pl.pallas_call(
            functools.partial(_bmm_kacc_scratch_kernel, **kern_kw),
            out_shape=out_shape,
            grid_spec=pltpu.PrefetchScalarGridSpec(
                num_scalar_prefetch=0,
                grid=(B, mt, nt, kt),
                in_specs=[
                    pl.BlockSpec((None, tm, tk), lambda b, i, j, k: (b, i, k)),
                    pl.BlockSpec((None, tk, tn), lambda b, i, j, k: (b, k, j)),
                ],
                out_specs=pl.BlockSpec((None, tm, tn), lambda b, i, j, k: (b, i, j)),
                scratch_shapes=[pltpu.VMEM((tm, tn), jnp.float32)],
            ),
            compiler_params=cparams,
            cost_estimate=cost,
        )(x_p, y_p)

    if (Mp, Np) != (M, N):
        out = out[:, :M, :N]
    return out


# ---------------------------------------------------------------------------
# Self-test
# ---------------------------------------------------------------------------

if __name__ == "__main__":
    key = jax.random.PRNGKey(0)
    k1, k2, k3, k4, k5, k6 = jax.random.split(key, 6)

    # 1) Tiny case (batch-fused small path), same shapes as the spec's test.
    B, M, K, N = 2, 16, 32, 16
    x = jax.random.normal(k1, (B, M, K), dtype=jnp.float32)
    y = jax.random.normal(k2, (B, K, N), dtype=jnp.float32)
    out = bmm(x, y)
    jax.block_until_ready(out)
    ref = jnp.einsum("bmk,bkn->bmn", x, y)
    assert out.shape == (B, M, N)
    assert jnp.allclose(out, ref, atol=1e-5, rtol=1e-5)

    # 2) Moderate case (general path, tk=K fast path: no reduction grid axis).
    B2, M2, K2, N2 = 2, 256, 1024, 256
    x2 = jax.random.normal(k3, (B2, M2, K2), dtype=jnp.float32)
    y2 = jax.random.normal(k4, (B2, K2, N2), dtype=jnp.float32)
    out2 = bmm(x2, y2)
    jax.block_until_ready(out2)
    ref2 = jnp.einsum("bmk,bkn->bmn", x2, y2)
    assert out2.shape == (B2, M2, N2)
    assert jnp.allclose(out2, ref2, rtol=2e-2, atol=1e-1)

    # 3) Large-K case (general path, K tiled, f32 accumulate directly into output,
    #    plus the v7x two-tile parallel split for B=1).
    B3, M3, K3, N3 = 1, 512, 4096, 512
    x3 = jax.random.normal(k5, (B3, M3, K3), dtype=jnp.float32)
    y3 = jax.random.normal(k6, (B3, K3, N3), dtype=jnp.float32)
    out3 = bmm(x3, y3)
    jax.block_until_ready(out3)
    ref3 = jnp.einsum("bmk,bkn->bmn", x3, y3)
    assert out3.shape == (B3, M3, N3)
    assert jnp.allclose(out3, ref3, rtol=2e-2, atol=2e-1)

    print("KERNEL_OK")
</pallas_src>

<mosaic_0001>
module attributes {stable_mosaic.version = 11 : i64} {
  func.func @_bmm_small_kernel(%arg0: i32, %arg1: memref<2x16x32xf32, #tpu.memory_space<vmem>>, %arg2: memref<2x32x16xf32, #tpu.memory_space<vmem>>, %arg3: memref<2x16x16xf32, #tpu.memory_space<vmem>>) attributes {dimension_semantics = [#tpu.dimension_semantics<parallel>], iteration_bounds = array<i64: 1>, scalar_prefetch = 0 : i64, scratch_operands = 0 : i64, tpu.core_type = #tpu.core_type<tc>, window_params = [{transform_indices = @transform_0, window_bounds = array<i64: 2, 16, 32>}, {transform_indices = @transform_1, window_bounds = array<i64: 2, 32, 16>}, {transform_indices = @transform_2, window_bounds = array<i64: 2, 16, 16>}]} {
    %c0 = arith.constant 0 : index
    %c0_0 = arith.constant 0 : index
    %c0_1 = arith.constant 0 : index
    %0 = vector.load %arg1[%c0, %c0_0, %c0_1] : memref<2x16x32xf32, #tpu.memory_space<vmem>>, vector<2x16x32xf32>
    %c0_2 = arith.constant 0 : index
    %c0_3 = arith.constant 0 : index
    %c0_4 = arith.constant 0 : index
    %1 = vector.load %arg2[%c0_2, %c0_3, %c0_4] : memref<2x32x16xf32, #tpu.memory_space<vmem>>, vector<2x32x16xf32>
    "tpu.trace_start"() <{level = 10 : i32, message = "gmk,gkn->gmn"}> : () -> ()
    %cst = arith.constant dense<0.000000e+00> : vector<2x16x16xf32>
    %2 = tpu.matmul %0, %1, %cst {dimension_numbers = #tpu.dot_dimension_numbers<[2], [1], [1], [2], [0, 0, 0, 1, 1, 2], [0], [0]>} : vector<2x16x32xf32>, vector<2x32x16xf32>, vector<2x16x16xf32> -> vector<2x16x16xf32>
    "tpu.trace_stop"() : () -> ()
    %c0_5 = arith.constant 0 : index
    %c0_6 = arith.constant 0 : index
    %c0_7 = arith.constant 0 : index
    %3 = vector.load %arg3[%c0_5, %c0_6, %c0_7] : memref<2x16x16xf32, #tpu.memory_space<vmem>>, vector<2x16x16xf32>
    tpu.vector_store %arg3[%c0_5, %c0_6, %c0_7], %2 {strides = array<i32>} : memref<2x16x16xf32, #tpu.memory_space<vmem>>, vector<2x16x16xf32>,
    return
  }
  func.func @transform_0(%arg0: i32) -> (i32, i32, i32) {
    %c0_i32 = arith.constant 0 : i32
    %c0_i32_0 = arith.constant 0 : i32
    %c0_i32_1 = arith.constant 0 : i32
    return %arg0, %c0_i32, %c0_i32_0 : i32, i32, i32
  }
  func.func @transform_1(%arg0: i32) -> (i32, i32, i32) {
    %c0_i32 = arith.constant 0 : i32
    %c0_i32_0 = arith.constant 0 : i32
    %c0_i32_1 = arith.constant 0 : i32
    return %arg0, %c0_i32, %c0_i32_0 : i32, i32, i32
  }
  func.func @transform_2(%arg0: i32) -> (i32, i32, i32) {
    %c0_i32 = arith.constant 0 : i32
    %c0_i32_0 = arith.constant 0 : i32
    %c0_i32_1 = arith.constant 0 : i32
    return %arg0, %c0_i32, %c0_i32_0 : i32, i32, i32
  }
}

</mosaic_0001>

<bundles_post_ra>
// kernel: tpu_custom_call.1
= control target key start
LH: loop header
LB: loop body
LE: loop exit
PB: predicated region body
PF: predicated region fallthrough
CT: control target
= control target key end

     0   :  { %vm24_vm0 = vcmask 261120   ;;  %s359_s0 = inlined_call_operand.vmem [shape: f32[2,16,32], index: 0, kind: input, shape index: {}]   ;;  %s360_s1 = inlined_call_operand.vmem [shape: f32[2,32,16], index: 1, kind: input, shape index: {}]   ;;  %s361_s2 = inlined_call_operand.hbm [shape: f32[2,16,16], index: 2, kind: output, shape index: {}]  }
   0x1   :  { %v16_v0 = vld [vmem:[%s360_s1] sm:$0xff]  ;;  %v17_v1 = vld [vmem:[%s360_s1 + $0x8] sm:$0xff]  ;;  %v18_v5 = vld [vmem:[%s360_s1 + $0x10] sm:$0xff] }
   0x2   :  { %v20_v2 = vld [vmem:[%s360_s1 + $0x20] sm:$0xff]  ;;  %v246_v3 = vpack.c.bf16 %v17_v1, %v16_v0  ;;  %v21_v4 = vld [vmem:[%s360_s1 + $0x28] sm:$0xff]  ;;  %v19_v6 = vld [vmem:[%s360_s1 + $0x18] sm:$0xff] }
   0x3   :  { %v254_v7 = vpack.c.bf16 %v21_v4, %v20_v2  ;;  %v250_v8 = vpack.c.bf16 %v19_v6, %v18_v5  ;;  %v22_v9 = vld [vmem:[%s360_s1 + $0x30] sm:$0xff]  ;;  %v23_v10 = vld [vmem:[%s360_s1 + $0x38] sm:$0xff]  ;;  %v12_v11 = vld [vmem:[%s359_s0] sm:$0xff] }
   0x4   :  { %247 = vmatprep.subr.bf16.mxu0 %v246_v3  ;;  %v258_v12 = vpack.c.bf16 %v23_v10, %v22_v9  ;;  %232 = vmatprep.mubr.msk.f32.mxu0 %vm24_vm0, %v12_v11  ;;  %v14_v13 = vld [vmem:[%s359_s0 + $0x10] sm:$0xff] }
   0x5   :  { %255 = vmatprep.subr.bf16.mxu1 %v254_v7  ;;  %249 = vmatpush3.bf16.msra.mxu0 %v246_v3 }
   0x6   :  { %7 = vsyncpa [#allocation3], 0  ;;  %257 = vmatpush3.bf16.msra.mxu1 %v254_v7  ;;  %251 = vmatprep.subr.bf16.mxu0 %v250_v8  ;;  %v13_v14 = vld [vmem:[%s359_s0 + $0x8] sm:$0xff]  ;;  %v15_v15 = vld [vmem:[%s359_s0 + $0x18] sm:$0xff]  ;;  %s289_s4 = smov [#allocation2]   ;;  %vm187_vm1 = vcmask 130048  }
   0x7   :  { %259 = vmatprep.subr.bf16.mxu1 %v258_v12  ;;  %243 = vmatprep.mubr.msk.f32.mxu1 %vm24_vm0, %v14_v13  ;;  %s197_s5 = sshll.u32 %s289_s4, 4  ;;  %s198_s5 = int_to_ptr.vmem [resolvable:$true] %s197_s5 }
   0x8   :  { %s265_s6 = scalar_lea.vmem %s198_s5, 512  ;;  %p270_p1 = scmp.lt.s32.totalorder %s198_s5, %s198_s5 }
   0x9   :  { %253 = vmatpush3.bf16.msra.mxu0 %v250_v8  ;;  %p266_p0 = scmp.ne.s32.totalorder %s198_s5, %s265_s6  ;;  %p271_p2 = scmp.lt.s32.totalorder %s265_s6, %s265_s6 }
   0xa   :  { %261 = vmatpush3.bf16.msra.mxu1 %v258_v12 }
   0xb   :  { %p272_p3 = por %p271_p2, %p270_p1 }
   0xc   :  { %233 = vmatmul.mubr.msk.f32.vlgmr.msra.gmra.mrb[0].mxu0 %vm24_vm0, %v13_v14 }
   0xd   :  { %244 = vmatmul.mubr.msk.f32.vlgmr.msra.gmra.mrb[0].mxu1 %vm24_vm0, %v15_v15  ;;  %p273_p4 = pnand %p272_p3, %p266_p0 }
  0xdf   :  { %v234_v16 = vpop.f32.mrb[0].mxu0 }
  0xe0   :  { %189 = vst.msk [vmem:[#allocation2 + $0x8] sm:$0xff] %vm187_vm1, %v234_v16  ;;  %v245_v17 = vpop.f32.mrb[0].mxu1  ;;  %v97_v18 = vpop.f32.mrb[1].mxu0 }
  0xe1   :  { %191 = vst.msk [vmem:[#allocation2 + $0x18] sm:$0xff] %vm187_vm1, %v245_v17  ;;  %188 = vst.msk [vmem:[#allocation2] sm:$0xff] %vm187_vm1, %v97_v18  ;;  %v178_v19 = vpop.f32.mrb[1].mxu1 }
  0xe2   :  { %190 = vst.msk [vmem:[#allocation2 + $0x10] sm:$0xff] %vm187_vm1, %v178_v19 }
  0xe3   :  { %276 = shalt.err (!%p273_p4)
}
  0xe4   :  { %s277_s8 = scalar_lea.hbm %s361_s2, 512 }
  0xe5   :  { %p278_p5 = scmp.ne.s32.totalorder %s361_s2, %s277_s8  ;;  %p281_p6 = scmp.lt.u32.totalorder %s277_s8, %s361_s2 }
  0xe7   :  { %p283_p7 = pnand %p281_p6, %p278_p5 }
  0xe9   :  { %286 = shalt.err (!%p283_p7)
}
  0xea   :  { %s290_s13 = smov 128   ;;  %s291_s14 = smov 8  }
  0xeb   :  { %203 = dma.vmem_to_hbm [thread:$0]  %s198_s5, 512, %s361_s2, [#allocation3], %s290_s13, %s290_s13, %s291_s14  }
  0xec   :  { %287 = dma.done.wait [#allocation3], 512  }
  0xed   :  { %288 = vsyncadd [#allocation3], 4294966784 }
  0xee   :  { %207 = vsyncpa [#allocation3], 1 }

</bundles_post_ra>
